<compile_context>
chip_gen: v7x
topology: tpu7x:2x2x1
jax: 0.10.0
libtpu: 0.0.40
codegen_flags: <defaults>
</compile_context>

<pallas_src>
import functools

import jax
import jax.numpy as jnp
from jax.experimental import pallas as pl
from jax.experimental.pallas import tpu as pltpu


def _linear_kernel(x_ref, w_ref, b_ref, o_ref):
    # x_ref: (tile_m, K) f32 activations -> cast to bf16 for the MXU
    # w_ref: (K, tile_n) bf16 weight tile (VMEM-resident across M steps)
    # b_ref: (1, tile_n) f32 bias tile
    # o_ref: (tile_m, tile_n) f32 output tile (last N tile clipped by Pallas)
    x = x_ref[...].astype(w_ref.dtype)
    acc = jnp.dot(x, w_ref[...], preferred_element_type=jnp.float32)
    o_ref[...] = (acc + b_ref[...]).astype(o_ref.dtype)


def init_classifier_params(w, b, *, param_dtype=jnp.bfloat16):
    """One-time (init-time) parameter preparation.

    w: (out_dim, embed_dim) PyTorch nn.Linear weight, b: (out_dim,) bias.
    Returns (w_t, b_p): weight transposed to (embed_dim, n_pad) in bf16 and
    bias as (1, n_pad) in f32.  n_pad = round_up(out_dim, 256) so the padded
    N axis splits into two equal 128-multiple halves (even megacore split on
    v7x, and only 2 N grid steps everywhere).
    """
    out_dim, embed_dim = w.shape
    n_pad = pl.cdiv(out_dim, 256) * 256  # 8196 -> 8448 = 128 * 66
    w_t = jnp.zeros((embed_dim, n_pad), param_dtype)
    w_t = w_t.at[:, :out_dim].set(w.T.astype(param_dtype))
    b_p = jnp.zeros((1, n_pad), jnp.float32)
    b_p = b_p.at[:, :out_dim].set(b.astype(jnp.float32)[None, :])
    return w_t, b_p


@functools.partial(jax.jit, static_argnames=("out_dim",))
def classifier_forward(x, w_t, b_p, *, out_dim):
    """x: (..., K) f32; w_t: (K, N_pad) bf16; b_p: (1, N_pad) f32.
    Returns (..., out_dim) f32."""
    K, n_pad = w_t.shape
    lead = x.shape[:-1]
    M = 1
    for d in lead:
        M *= d
    x2 = x.reshape(M, K)

    # Exactly two N tiles (n_pad is a multiple of 256 by construction): even
    # split across v7x's two TensorCores, minimal per-step overhead elsewhere.
    tile_n = n_pad // 2 if n_pad >= 256 else n_pad
    n_tiles = n_pad // tile_n
    # tile_m <= 256 keeps the double-buffered f32 out block (<= ~8.6 MiB)
    # comfortably inside v7x's 64 MiB VMEM.
    tile_m = M if M <= 256 else 256
    m_tiles = pl.cdiv(M, tile_m)

    # Grid: N outer ("parallel" -> megacore split), M inner ("arbitrary").
    # Weight / bias index_maps ignore the M index, so within each N tile the
    # weight is DMA'd once and reused across every M step.
    grid = (n_tiles, m_tiles)

    cost = pl.CostEstimate(
        flops=2 * M * K * n_pad,
        transcendentals=0,
        bytes_accessed=(x2.size * x2.dtype.itemsize
                        + w_t.size * w_t.dtype.itemsize
                        + b_p.size * b_p.dtype.itemsize
                        + M * out_dim * 4),
    )

    out = pl.pallas_call(
        _linear_kernel,
        out_shape=jax.ShapeDtypeStruct((M, out_dim), x.dtype),
        grid_spec=pltpu.PrefetchScalarGridSpec(
            num_scalar_prefetch=0,
            grid=grid,
            in_specs=[
                pl.BlockSpec((tile_m, K), lambda j, i: (i, 0)),   # activations
                pl.BlockSpec((K, tile_n), lambda j, i: (0, j)),   # weight (resident over M)
                pl.BlockSpec((1, tile_n), lambda j, i: (0, j)),   # bias (resident over M)
            ],
            out_specs=pl.BlockSpec((tile_m, tile_n), lambda j, i: (i, j)),
        ),
        compiler_params=pltpu.CompilerParams(
            dimension_semantics=("parallel", "arbitrary"),
            vmem_limit_bytes=32 * 1024 * 1024,
        ),
        cost_estimate=cost,
    )(x2, w_t, b_p)

    return out.reshape(*lead, out_dim)


if __name__ == "__main__":
    # Small, module-consistent shapes: batch=2, seq=8, embed_dim=32.
    embed_dim = 32
    out_dim = 8196  # fixed by the module: nn.Linear(embed_dim, 8196)

    key = jax.random.PRNGKey(0)
    kx, kw, kb = jax.random.split(key, 3)

    x = jax.random.normal(kx, (2, 8, embed_dim), dtype=jnp.float32)

    # PyTorch-style uniform(-1/sqrt(K), 1/sqrt(K)) init.
    bound = 1.0 / (embed_dim ** 0.5)
    w = jax.random.uniform(kw, (out_dim, embed_dim), jnp.float32, -bound, bound)
    b = jax.random.uniform(kb, (out_dim,), jnp.float32, -bound, bound)

    # One-time parameter preparation (init-time, NOT per forward call).
    w_t, b_p = init_classifier_params(w, b)

    y = classifier_forward(x, w_t, b_p, out_dim=out_dim)
    jax.block_until_ready(y)
    assert y.shape == (2, 8, out_dim), y.shape

    # Tight check vs. a reference with the same bf16 operand rounding and f32
    # accumulation as the kernel.
    y_ref_bf16 = (
        jnp.dot(
            x.reshape(-1, embed_dim).astype(jnp.bfloat16),
            w.T.astype(jnp.bfloat16),
            preferred_element_type=jnp.float32,
        ).reshape(2, 8, out_dim)
        + b
    )
    assert jnp.allclose(y, y_ref_bf16, atol=1e-3, rtol=1e-3), float(
        jnp.max(jnp.abs(y - y_ref_bf16))
    )

    # Loose sanity check vs. the full-precision module semantics.
    # TODO(synk): keep an f32-weight path if bit-level parity with torch is required.
    y_ref_f32 = x @ w.T + b
    assert jnp.allclose(y, y_ref_f32, atol=5e-2, rtol=5e-2), float(
        jnp.max(jnp.abs(y - y_ref_f32))
    )

    print("KERNEL_OK")
</pallas_src>

<mosaic_0001>
module attributes {stable_mosaic.version = 11 : i64} {
  func.func @_linear_kernel(%arg0: i32, %arg1: i32, %arg2: memref<16x32xf32, #tpu.memory_space<vmem>>, %arg3: memref<32x4224xbf16, #tpu.memory_space<vmem>>, %arg4: memref<1x4224xf32, #tpu.memory_space<vmem>>, %arg5: memref<16x4224xf32, #tpu.memory_space<vmem>>) attributes {dimension_semantics = [#tpu.dimension_semantics<parallel>, #tpu.dimension_semantics<arbitrary>], iteration_bounds = array<i64: 2, 1>, scalar_prefetch = 0 : i64, scratch_operands = 0 : i64, tpu.core_type = #tpu.core_type<tc>, window_params = [{transform_indices = @transform_0, window_bounds = array<i64: 16, 32>}, {transform_indices = @transform_1, window_bounds = array<i64: 32, 4224>}, {transform_indices = @transform_2, window_bounds = array<i64: 1, 4224>}, {transform_indices = @transform_3, window_bounds = array<i64: 16, 4224>}]} {
    %c0 = arith.constant 0 : index
    %c0_0 = arith.constant 0 : index
    %0 = vector.load %arg2[%c0, %c0_0] : memref<16x32xf32, #tpu.memory_space<vmem>>, vector<16x32xf32>
    %1 = arith.truncf %0 : vector<16x32xf32> to vector<16x32xbf16>
    %c0_1 = arith.constant 0 : index
    %c0_2 = arith.constant 0 : index
    %2 = vector.load %arg3[%c0_1, %c0_2] : memref<32x4224xbf16, #tpu.memory_space<vmem>>, vector<32x4224xbf16>
    %cst = arith.constant dense<0.000000e+00> : vector<16x4224xf32>
    %3 = tpu.matmul %1, %2, %cst {dimension_numbers = #tpu.dot_dimension_numbers<[1], [0], [0], [1], [0, 0, 1, 1], [], []>} : vector<16x32xbf16>, vector<32x4224xbf16>, vector<16x4224xf32> -> vector<16x4224xf32>
    %c0_3 = arith.constant 0 : index
    %c0_4 = arith.constant 0 : index
    %4 = vector.load %arg4[%c0_3, %c0_4] : memref<1x4224xf32, #tpu.memory_space<vmem>>, vector<1x4224xf32>
    %5 = vector.broadcast %4 : vector<1x4224xf32> to vector<16x4224xf32>
    %6 = arith.addf %3, %5 : vector<16x4224xf32>
    %c0_5 = arith.constant 0 : index
    %c0_6 = arith.constant 0 : index
    %7 = vector.load %arg5[%c0_5, %c0_6] : memref<16x4224xf32, #tpu.memory_space<vmem>>, vector<16x4224xf32>
    tpu.vector_store %arg5[%c0_5, %c0_6], %6 {strides = array<i32>} : memref<16x4224xf32, #tpu.memory_space<vmem>>, vector<16x4224xf32>,
    return
  }
  func.func @transform_0(%arg0: i32, %arg1: i32) -> (i32, i32) {
    %c0_i32 = arith.constant 0 : i32
    %c0_i32_0 = arith.constant 0 : i32
    return %arg1, %c0_i32 : i32, i32
  }
  func.func @transform_1(%arg0: i32, %arg1: i32) -> (i32, i32) {
    %c0_i32 = arith.constant 0 : i32
    %c0_i32_0 = arith.constant 0 : i32
    return %c0_i32, %arg0 : i32, i32
  }
  func.func @transform_2(%arg0: i32, %arg1: i32) -> (i32, i32) {
    %c0_i32 = arith.constant 0 : i32
    %c0_i32_0 = arith.constant 0 : i32
    return %c0_i32, %arg0 : i32, i32
  }
  func.func @transform_3(%arg0: i32, %arg1: i32) -> (i32, i32) {
    %c0_i32 = arith.constant 0 : i32
    return %arg1, %arg0 : i32, i32
  }
}

</mosaic_0001>

<bundles_post_ra>
// kernel: classifier_forward.1
= control target key start
LH: loop header
LB: loop body
LE: loop exit
PB: predicated region body
PF: predicated region fallthrough
CT: control target
= control target key end

     0   :  { %s2830_s0 = inlined_call_operand.hbm [shape: f32[16,32], index: 0, kind: input, shape index: {}]   ;;  %s2831_s1 = inlined_call_operand.hbm [shape: bf16[32,8448], index: 1, kind: input, shape index: {}]   ;;  %s2832_s2 = inlined_call_operand.hbm [shape: f32[1,8448], index: 2, kind: input, shape index: {}]   ;;  %s2833_s3 = inlined_call_operand.hbm [shape: f32[16,8196], index: 3, kind: output, shape index: {}]  }
   0x1   :  { %2841 = sst [smem:[#allocation13_spill]] %s2831_s1 }
   0x2   :  { %8 = vsyncpa [#allocation3], 0 }
   0x3   :  { %9 = vsyncpa [#allocation6], 0 }
   0x4   :  { %11 = vsyncpa [#allocation6 + $0x1], 0 }
   0x5   :  { %12 = vsyncpa [#allocation4], 0 }
   0x6   :  { %14 = vsyncpa [#allocation4 + $0x1], 0  ;;  %s2306_s12 = smov 0   ;;  %s2308_s13 = smov 0  }
   0x7   :  { %s2310_s14 = smov 0   ;;  %s2312_s15 = smov 0  }
   0x8   :  { %s2314_s16 = smov 0   ;;  %s2316_s17 = smov 0  }
   0x9 LB: > { %s32_s18 = sadd.s32 1, %s2266_s16  ;;  %s65_s19 = sadd.s32 1, %s2258_s14  ;;  %s2270_s17 = sphi %s2316_s17, %s20_s17   ;;  %s2266_s16 = sphi %s2314_s16, %s2865_s16   ;;  %s2262_s15 = sphi %s2312_s15, %s2864_s15   ;;  %s2258_s14 = sphi %s2310_s14, %s2863_s14   ;;  %s2254_s13 = sphi %s2308_s13, %s2862_s13   ;;  %s2250_s12 = sphi %s2306_s12, %s2861_s12  }
   0xa   : > { %p34_p0 = scmp.ge.s32.totalorder %s32_s18, 2  ;;  %p72_p1 = scmp.ne.s32.totalorder %s2258_s14, %s2254_s13 }
   0xb   : > { %p73_p2 = scmp.eq.s32.totalorder %s2270_s17, 0  ;;  %p1936_p5 = scmp.lt.s32.totalorder %s2270_s17, 2 }
   0xc   : > { %s2867_s18 = smov (%p34_p0, %s32_s18), 0  ;;  %s172_s21 = sand.u32 1, %s2270_s17  }
   0xd   : > { %2842 = sst [smem:[#allocation12_spill]] %s2867_s18  ;;  %p74_p4 = por %p73_p2, %p72_p1 }
   0xe   : > { %s62_s20 = ssub.s32 %s2266_s16, %s2867_s18  ;;  %s174_s22 = sand.u32 1, %s2258_s14  }
   0xf   : > { %p63_p6 = scmp.eq.s32.totalorder %s62_s20, 0  ;;  %s1891_s23 = smul.u32 2112, %s2266_s16 }
  0x10   : > { %s1907_s25 = smul.u32 528, %s174_s22  ;;  %s2843_s1 = sld [smem:[#allocation13_spill]] }
  0x11   : > { %s2354_s24 = scalar_select %p63_p6, %s2258_s14, %s65_s19  }
  0x12   : > { %p2363_p7 = pnand %p1936_p5, %p74_p4  ;;  %s176_s30 = scalar_lea.vmem [#allocation5], %s1907_s25 }
  0x13   : > { %s183_s4 = sshll.u32 %s176_s30, 4  ;;  %s2369_s5 = scalar_lea.sflag [#allocation6], %s172_s21  ;;  %s2367_s4 = int_to_ptr.vmem [resolvable:$true] %s183_s4 }
  0x14   : > { %s2844_s29 = scalar_select %p2363_p7, 1, 0 }
  0x15   : > { %p2836_p9 = pneg %p2363_p7 }
  0x16   : > { %s2361_s28 = scalar_lea.hbm %s2843_s1, %s1891_s23  ;;  %s2101_s9 = scalar_lea.hbm %s2843_s1, 16896 }
  0x17   : > { %s2096_s6 = scalar_lea.hbm %s2361_s28, 8448  ;;  %p2102_p12 = scmp.lt.u32.totalorder %s2361_s28, %s2843_s1 }
  0x18   : > { %p2097_p8 = scmp.ne.s32.totalorder %s2361_s28, %s2096_s6  ;;  %p2103_p13 = scmp.lt.u32.totalorder %s2101_s9, %s2096_s6 }
  0x19   : > { %p2105_p2 = scmp.lt.u32.totalorder %s2096_s6, %s2361_s28 }
  0x1a   : > { %p2099_p10 = pnand %p2836_p9, %p2097_p8  ;;  %p2104_p0 = por %p2103_p13, %p2102_p12 }
  0x1c   : > { %p2100_p11 = pneg %p2099_p10  ;;  %p2106_p4 = por %p2105_p2, %p2104_p0 }
  0x1e   : > { %p2107_p5 = pnand %p2106_p4, %p2100_p11 }
  0x20   : > { %2110 = shalt.err (!%p2107_p5)
}
  0x21   : > { %s2111_s19 = scalar_lea.vmem %s2367_s4, 8448  ;;  %s2272_s20 = smov [#allocation5]  }
  0x22   : > { %p2112_p6 = scmp.ne.s32.totalorder %s2367_s4, %s2111_s19  ;;  %s2116_s21 = sshll.u32 %s2272_s20, 4  ;;  %s2117_s21 = int_to_ptr.vmem [resolvable:$false] %s2116_s21 }
  0x23   : > { %s2118_s23 = scalar_lea.vmem %s2117_s21, 16896  ;;  %p2119_p3 = scmp.lt.s32.totalorder %s2367_s4, %s2117_s21 }
  0x24   : > { %p2114_p8 = pnand %p2112_p6, %p2836_p9  ;;  %p2120_p12 = scmp.lt.s32.totalorder %s2118_s23, %s2111_s19 }
  0x26   : > { %p2115_p10 = pneg %p2114_p8  ;;  %p2121_p13 = por %p2120_p12, %p2119_p3 }
  0x28   : > { %p2122_p0 = pnand %p2121_p13, %p2115_p10 }
  0x2a   : > { %2125 = shalt.err (!%p2122_p0)
}
  0x2b   : > { %s2273_s25 = smov 4224   ;;  %s2274_s26 = smov 2112  }
  0x2c   : > { %s2275_s27 = smov 132   ;;  %s2398_s30 = sadd.s32 4294967295, %s2270_s17  }
  0x2d   : > { %1927 = dma.hbm_to_vmem [thread:$0]  (!%p2363_p7), %s2361_s28, 8448, %s2367_s4, %s2369_s5, %s2273_s25, %s2274_s26, %s2275_s27  }
  0x2e   : > { %s1791_s6 = sadd.s32 4294967294, %s2270_s17   ;;  %p78_p3 = scmp.ne.s32.totalorder %s2254_s13, %s2250_s12 }
  0x2f   : > { %p2835_p11 = scmp.eq.s32.totalorder %s2398_s30, 0  ;;  %p130_p2 = scmp.eq.s32.totalorder %s2398_s30, 1 }
  0x30   : > { %p136_p4 = scmp.eq.s32.totalorder %s1791_s6, 1  ;;  %p1792_p6 = scmp.ge.s32.totalorder %s2270_s17, 1 }
  0x31   : > { %p2407_p5 = por %p2835_p11, %p78_p3  ;;  %p2415_p8 = por %p130_p2, %p72_p1 }
  0x32   : > { %p2419_p10 = por %p136_p4, %p78_p3  ;;  %p143_p12 = scmp.lt.s32.totalorder %s2270_s17, 3 }
  0x33   : > { %s2845_s7 = scalar_select %p2407_p5, 1, 0 }
  0x34   : > { %s2846_s28 = scalar_select %p2415_p8, 1, 0 }
  0x35   : > { %s2847_s4 = scalar_select %p2419_p10, 1, 0 }
  0x36   : > { %p2424_p13 = pnand %p1792_p6, %p143_p12  ;;  %s2276_s9 = smov [#allocation2]  }
  0x37   : > { %s158_s10 = sshll.u32 %s2276_s9, 4  ;;  %s1908_s11 = smul.u32 33, %s174_s22  ;;  %s2428_s10 = int_to_ptr.vmem [resolvable:$true] %s158_s10 }
  0x38   : > { %s2848_s8 = scalar_select %p2424_p13, 1, 0 }
  0x39   : > { %p1920_p0 = pneg %p2424_p13  ;;  %s1892_s19 = smul.u32 528, %s2266_s16 }
  0x3a   : > { %s197_s26 = scalar_lea.vmem [#allocation7], %s1908_s11  ;;  %s2126_s22 = scalar_lea.hbm %s2830_s0, 256 }
  0x3b   : > { %p2437_p1 = pnand %p1920_p0, %p2835_p11  ;;  %s2444_s25 = scalar_lea.hbm %s2832_s2, %s1892_s19 }
  0x3c   : > { %s205_s27 = sshll.u32 %s197_s26, 4  ;;  %p2127_p3 = scmp.ne.s32.totalorder %s2830_s0, %s2126_s22  ;;  %s2446_s27 = int_to_ptr.vmem [resolvable:$true] %s205_s27 }
  0x3d   : > { %p2128_p2 = pneg %p2437_p1  ;;  %p2133_p12 = scmp.lt.u32.totalorder %s2126_s22, %s2830_s0 }
  0x3f   : > { %p2129_p4 = pnand %p2128_p2, %p2127_p3 }
  0x41   : > { %p2130_p6 = pneg %p2129_p4 }
  0x43   : > { %p2135_p0 = pnand %p2133_p12, %p2130_p6 }
  0x45   : > { %2138 = shalt.err (!%p2135_p0)
}
  0x46   : > { %s2139_s11 = scalar_lea.vmem %s2428_s10, 256  ;;  %p2147_p8 = scmp.lt.s32.totalorder %s2428_s10, %s2428_s10 }
  0x47   : > { %p2140_p11 = scmp.ne.s32.totalorder %s2428_s10, %s2139_s11  ;;  %p2148_p5 = scmp.lt.s32.totalorder %s2139_s11, %s2139_s11 }
  0x49   : > { %p2142_p9 = pnand %p2140_p11, %p2128_p2  ;;  %p2149_p13 = por %p2148_p5, %p2147_p8 }
  0x4b   : > { %p2143_p10 = pneg %p2142_p9 }
  0x4d   : > { %p2150_p7 = pnand %p2149_p13, %p2143_p10 }
  0x4f   : > { %2153 = shalt.err (!%p2150_p7)
}
  0x50   : > { %s2277_s1 = smov 128   ;;  %s2278_s18 = smov 8  }
  0x51   : > { %1923 = dma.hbm_to_vmem [thread:$0]  (!%p2437_p1), %s2830_s0, 256, %s2428_s10, [#allocation3], %s2277_s1, %s2277_s1, %s2278_s18  }
  0x52   : > { %s2154_s6 = scalar_lea.hbm %s2444_s25, 528  ;;  %p2850_p11 = scmp.ne.s32.totalorder %s2844_s29, 0 }
  0x53   : > { %p2155_p9 = scmp.ne.s32.totalorder %s2444_s25, %s2154_s6  ;;  %s2159_s21 = scalar_lea.hbm %s2832_s2, 1056 }
  0x54   : > { %p2851_p5 = pneg %p2850_p11  ;;  %p2160_p10 = scmp.lt.u32.totalorder %s2444_s25, %s2832_s2 }
  0x55   : > { %p2161_p13 = scmp.lt.u32.totalorder %s2159_s21, %s2154_s6  ;;  %p2163_p2 = scmp.lt.u32.totalorder %s2154_s6, %s2444_s25 }
  0x56   : > { %p2157_p8 = pnand %p2155_p9, %p2851_p5 }
  0x57   : > { %p2162_p3 = por %p2161_p13, %p2160_p10 }
  0x58   : > { %p2158_p7 = pneg %p2157_p8 }
  0x59   : > { %p2164_p4 = por %p2163_p2, %p2162_p3 }
  0x5b   : > { %p2165_p6 = pnand %p2164_p4, %p2158_p7 }
  0x5d   : > { %2168 = shalt.err (!%p2165_p6)
}
  0x5e   : > { %s2169_s10 = scalar_lea.vmem %s2446_s27, 528  ;;  %p2852_p12 = pmov %p2851_p5 }
  0x5f   : > { %p2170_p1 = scmp.ne.s32.totalorder %s2446_s27, %s2169_s10  ;;  %s2279_s20 = smov [#allocation7]  }
  0x60   : > { %s2174_s1 = sshll.u32 %s2279_s20, 4  ;;  %s2175_s1 = int_to_ptr.vmem [resolvable:$false] %s2174_s1 }
  0x61   : > { %p2172_p0 = pnand %p2170_p1, %p2852_p12  ;;  %s2176_s18 = scalar_lea.vmem %s2175_s1, 1056 }
  0x62   : > { %p2177_p5 = scmp.lt.s32.totalorder %s2446_s27, %s2175_s1  ;;  %p2178_p8 = scmp.lt.s32.totalorder %s2176_s18, %s2169_s10 }
  0x63   : > { %p2173_p9 = pneg %p2172_p0 }
  0x64   : > { %p2179_p10 = por %p2178_p8, %p2177_p5 }
  0x66   : > { %p2180_p13 = pnand %p2179_p10, %p2173_p9 }
  0x68   : > { %2183 = shalt.err (!%p2180_p13)
}
  0x69   : > { %1930 = dma.hbm_to_vmem [thread:$0]  (!%p2850_p11), %s2444_s25, 528, %s2446_s27, %s2369_s5  }
  0x6a   : > { %p2853_p7 = scmp.ne.s32.totalorder %s2848_s8, 0 }
  0x6b   : > { %p2854_p3 = scmp.eq.s32.totalorder (!%p2853_p7), %s2398_s30, 0 }
  0x6c   : > { %214 = sbr.rel (%p2853_p7) target bundleno = 441 (0x1b9), region = 32 }
  0x73   : > { %2237 = dma.done.wait (%p2854_p3), [#allocation3], 256   ;;  %p2855_p2 = pmov %p2854_p3 }
  0x74   : > { %s220_s19 = sand.u32 1, %s2398_s30   ;;  %s2501_s26 = sand.u32 1, %s2254_s13  }
  0x75   : > { %2239 = vsyncadd (%p2855_p2), [#allocation3], 4294967040  ;;  %s1909_s29 = smul.u32 528, %s2501_s26  ;;  %s221_s6 = scalar_lea.sflag [#allocation6], %s220_s19 }
  0x76   : > { %p2856_p11 = scmp.ne.s32.totalorder %s2845_s7, 0 }
  0x77   : > { %s2506_s5 = scalar_lea.vmem [#allocation5], %s1909_s29 }
  0x78   : > { %2241 = dma.done.wait (%p2856_p11), %s221_s6, 8976  }
  0x79   : > { %2243 = vsyncadd (%p2856_p11), %s221_s6, 4294958320  ;;  %v2280_v0 = vmov 0   ;;  %v1998_v1 = vld [vmem:[%s2506_s5 + $0x4] ss:$132 sps:$4 sm:$0xff]   ;;  %v2001_v3 = vld [vmem:[%s2506_s5 + $0x10c] ss:$132 sps:$4 sm:$0xff]  }
  0x7a   : > { %885 = vmatprep.mubr.bf16.mxu0 %v2280_v0  ;;  %928 = vmatprep.mubr.bf16.mxu1 %v2280_v0  ;;  %v2000_v2 = vld [vmem:[%s2506_s5] ss:$132 sps:$4 sm:$0xff]   ;;  %v2003_v4 = vld [vmem:[%s2506_s5 + $0x108] ss:$132 sps:$4 sm:$0xff]   ;;  %v2007_v9 = vld [vmem:[%s2506_s5 + $0x10] ss:$132 sps:$4 sm:$0xff]  }
  0x7b   : > { %853 = vmatprep.subr.bf16.mxu0 %v1998_v1  ;;  %v2004_v5 = vld [vmem:[%s2506_s5 + $0xc] ss:$132 sps:$4 sm:$0xff]   ;;  %v2009_v10 = vld [vmem:[%s2506_s5 + $0x14] ss:$132 sps:$4 sm:$0xff]   ;;  %vm849_vm0 = vcmask 261120   ;;  %vm2282_vm1 = vmmov 0  }
  0x7c   : > { %854 = vmatpush1.bf16.msra.mxu0 %v2000_v2  ;;  %v2006_v6 = vld [vmem:[%s2506_s5 + $0x8] ss:$132 sps:$4 sm:$0xff]   ;;  %v271_v7 = vld [vmem:[#allocation2] sm:$0xff]  ;;  %896 = vmatprep.subr.bf16.mxu1 %v2004_v5  ;;  %v2016_v16 = vld [vmem:[%s2506_s5 + $0x18] ss:$132 sps:$4 sm:$0xff]   ;;  %s1910_s30 = smul.u32 33, %s2501_s26 }
  0x7d   : > { %855 = vmatprep.subr.bf16.mxu0 %v2001_v3  ;;  %v272_v8 = vld [vmem:[#allocation2 + $0x8] sm:$0xff]  ;;  %897 = vmatpush1.bf16.msra.mxu1 %v2006_v6  ;;  %v2012_v13 = vld [vmem:[%s2506_s5 + $0x110] ss:$132 sps:$4 sm:$0xff]   ;;  %v2019_v20 = vld [vmem:[%s2506_s5 + $0x20] ss:$132 sps:$4 sm:$0xff]   ;;  %v2281_v6 = vmov 0.0  }
  0x7e   : > { %v2522_v11 = vpack.c.bf16 %v272_v8, %v271_v7  ;;  %v2010_v12 = vld [vmem:[%s2506_s5 + $0x114] ss:$132 sps:$4 sm:$0xff]   ;;  %v2015_v14 = vld [vmem:[%s2506_s5 + $0x11c] ss:$132 sps:$4 sm:$0xff]   ;;  %v2021_v18 = vld [vmem:[%s2506_s5 + $0x24] ss:$132 sps:$4 sm:$0xff]  }
  0x7f   : > { %898 = vmatprep.subr.bf16.mxu1 %v2010_v12  ;;  %v2018_v15 = vld [vmem:[%s2506_s5 + $0x1c] ss:$132 sps:$4 sm:$0xff]   ;;  %v2024_v19 = vld [vmem:[%s2506_s5 + $0x124] ss:$132 sps:$4 sm:$0xff]   ;;  %v2030_v22 = vld [vmem:[%s2506_s5 + $0x2c] ss:$132 sps:$4 sm:$0xff]  }
  0x80   : > { %856 = vmatpush1.bf16.msra.mxu0 %v2003_v4  ;;  %v2013_v17 = vld [vmem:[%s2506_s5 + $0x118] ss:$132 sps:$4 sm:$0xff]   ;;  %v2022_v21 = vld [vmem:[%s2506_s5 + $0x120] ss:$132 sps:$4 sm:$0xff]   ;;  %v2027_v23 = vld [vmem:[%s2506_s5 + $0x12c] ss:$132 sps:$4 sm:$0xff]  }
  0x81   : > { %939 = vmatprep.subr.bf16.mxu0 %v2009_v10  ;;  %899 = vmatpush1.bf16.msra.mxu1 %v2012_v13  ;;  %v2025_v24 = vld [vmem:[%s2506_s5 + $0x128] ss:$132 sps:$4 sm:$0xff]   ;;  %v2036_v26 = vld [vmem:[%s2506_s5 + $0x134] ss:$132 sps:$4 sm:$0xff]   ;;  %v2042_v30 = vld [vmem:[%s2506_s5 + $0x3c] ss:$132 sps:$4 sm:$0xff]  }
  0x82   : > { %982 = vmatprep.subr.bf16.mxu1 %v2018_v15  ;;  %v2028_v25 = vld [vmem:[%s2506_s5 + $0x28] ss:$132 sps:$4 sm:$0xff]   ;;  %v2033_v27 = vld [vmem:[%s2506_s5 + $0x34] ss:$132 sps:$4 sm:$0xff]   ;;  %v2039_v31 = vld [vmem:[%s2506_s5 + $0x13c] ss:$132 sps:$4 sm:$0xff]  }
  0x83   : > { %1866 = vmatmul.mubr.msk.bf16.vlgmr.msra.gmra.mrb[0].mxu0 %vm849_vm0, %v2522_v11  ;;  %v2031_v28 = vld [vmem:[%s2506_s5 + $0x30] ss:$132 sps:$4 sm:$0xff]   ;;  %v2037_v32 = vld [vmem:[%s2506_s5 + $0x138] ss:$132 sps:$4 sm:$0xff]   ;;  %v2048_v34 = vld [vmem:[%s2506_s5 + $0x144] ss:$132 sps:$4 sm:$0xff]  }
  0x84   : > { %940 = vmatpush1.bf16.msra.mxu0 %v2007_v9  ;;  %971 = vmatprep.mubr.bf16.mxu0 %v2280_v0  ;;  %v2034_v29 = vld [vmem:[%s2506_s5 + $0x130] ss:$132 sps:$4 sm:$0xff]   ;;  %v2040_v33 = vld [vmem:[%s2506_s5 + $0x38] ss:$132 sps:$4 sm:$0xff]   ;;  %v2045_v35 = vld [vmem:[%s2506_s5 + $0x44] ss:$132 sps:$4 sm:$0xff]  }
  0x85   : > { %941 = vmatprep.subr.bf16.mxu0 %v2015_v14  ;;  %1867 = vmatmul.mubr.msk.bf16.vlgmr.msra.gmra.mrb[0].mxu1 %vm849_vm0, %v2522_v11  ;;  %v2043_v36 = vld [vmem:[%s2506_s5 + $0x40] ss:$132 sps:$4 sm:$0xff]   ;;  %v2054_v38 = vld [vmem:[%s2506_s5 + $0x4c] ss:$132 sps:$4 sm:$0xff]   ;;  %v2060_v42 = vld [vmem:[%s2506_s5 + $0x154] ss:$132 sps:$4 sm:$0xff]  }
  0x86   : > { %983 = vmatpush1.bf16.msra.mxu1 %v2016_v16  ;;  %1014 = vmatprep.mubr.bf16.mxu1 %v2280_v0  ;;  %v2046_v37 = vld [vmem:[%s2506_s5 + $0x140] ss:$132 sps:$4 sm:$0xff]   ;;  %v2051_v39 = vld [vmem:[%s2506_s5 + $0x14c] ss:$132 sps:$4 sm:$0xff]   ;;  %v2057_v43 = vld [vmem:[%s2506_s5 + $0x54] ss:$132 sps:$4 sm:$0xff]  }
  0x87   : > { %984 = vmatprep.subr.bf16.mxu1 %v2024_v19  ;;  %v2049_v40 = vld [vmem:[%s2506_s5 + $0x148] ss:$132 sps:$4 sm:$0xff]   ;;  %v2055_v44 = vld [vmem:[%s2506_s5 + $0x50] ss:$132 sps:$4 sm:$0xff]   ;;  %v2066_v46 = vld [vmem:[%s2506_s5 + $0x5c] ss:$132 sps:$4 sm:$0xff]  }
  0x88   : > { %942 = vmatpush1.bf16.msra.mxu0 %v2013_v17  ;;  %v2052_v41 = vld [vmem:[%s2506_s5 + $0x48] ss:$132 sps:$4 sm:$0xff]   ;;  %v2058_v45 = vld [vmem:[%s2506_s5 + $0x150] ss:$132 sps:$4 sm:$0xff]   ;;  %v2063_v47 = vld [vmem:[%s2506_s5 + $0x15c] ss:$132 sps:$4 sm:$0xff]  }
  0x89   : > { %1025 = vmatprep.subr.bf16.mxu0 %v2021_v18  ;;  %v2061_v48 = vld [vmem:[%s2506_s5 + $0x158] ss:$132 sps:$4 sm:$0xff]   ;;  %v2072_v50 = vld [vmem:[%s2506_s5 + $0x164] ss:$132 sps:$4 sm:$0xff]   ;;  %v2078_v54 = vld [vmem:[%s2506_s5 + $0x6c] ss:$132 sps:$4 sm:$0xff]  }
  0x8a   : > { %985 = vmatpush1.bf16.msra.mxu1 %v2022_v21  ;;  %v2064_v49 = vld [vmem:[%s2506_s5 + $0x58] ss:$132 sps:$4 sm:$0xff]   ;;  %v2069_v51 = vld [vmem:[%s2506_s5 + $0x64] ss:$132 sps:$4 sm:$0xff]   ;;  %v2075_v55 = vld [vmem:[%s2506_s5 + $0x16c] ss:$132 sps:$4 sm:$0xff]  }
  0x8b   : > { %1868 = vmatmul.mubr.msk.bf16.vlgmr.msra.gmra.mrb[4].mxu0 %vm849_vm0, %v2522_v11  ;;  %1068 = vmatprep.subr.bf16.mxu1 %v2030_v22  ;;  %v2070_v52 = vld [vmem:[%s2506_s5 + $0x160] ss:$132 sps:$4 sm:$0xff]   ;;  %v2076_v56 = vld [vmem:[%s2506_s5 + $0x68] ss:$132 sps:$4 sm:$0xff]   ;;  %v2084_v58 = vld [vmem:[%s2506_s5 + $0x174] ss:$132 sps:$4 sm:$0xff]  }
  0x8c   : > { %1026 = vmatpush1.bf16.msra.mxu0 %v2019_v20  ;;  %1057 = vmatprep.mubr.bf16.mxu0 %v2280_v0  ;;  %v2067_v53 = vld [vmem:[%s2506_s5 + $0x60] ss:$132 sps:$4 sm:$0xff]   ;;  %v2073_v57 = vld [vmem:[%s2506_s5 + $0x168] ss:$132 sps:$4 sm:$0xff]   ;;  %v2081_v59 = vld [vmem:[%s2506_s5 + $0x74] ss:$132 sps:$4 sm:$0xff]  }
  0x8d   : > { %1027 = vmatprep.subr.bf16.mxu0 %v2027_v23  ;;  %1869 = vmatmul.mubr.msk.bf16.vlgmr.msra.gmra.mrb[4].mxu1 %vm849_vm0, %v2522_v11  ;;  %v2082_v60 = vld [vmem:[%s2506_s5 + $0x170] ss:$132 sps:$4 sm:$0xff]   ;;  %v2090_v62 = vld [vmem:[%s2506_s5 + $0x7c] ss:$132 sps:$4 sm:$0xff]   ;;  %v2093_v3 = vld [vmem:[%s2506_s5 + $0x184] ss:$132 sps:$4 sm:$0xff]  }
  0x8e   : > { %1069 = vmatpush1.bf16.msra.mxu1 %v2028_v25  ;;  %1100 = vmatprep.mubr.bf16.mxu1 %v2280_v0  ;;  %v2079_v61 = vld [vmem:[%s2506_s5 + $0x70] ss:$132 sps:$4 sm:$0xff]   ;;  %v2087_v63 = vld [vmem:[%s2506_s5 + $0x17c] ss:$132 sps:$4 sm:$0xff]   ;;  %v2095_v7 = vld [vmem:[%s2506_s5 + $0x188] ss:$132 sps:$4 sm:$0xff]  }
  0x8f   : > { %1070 = vmatprep.subr.bf16.mxu1 %v2036_v26  ;;  %v2088_v1 = vld [vmem:[%s2506_s5 + $0x78] ss:$132 sps:$4 sm:$0xff]   ;;  %v2091_v4 = vld [vmem:[%s2506_s5 + $0x180] ss:$132 sps:$4 sm:$0xff]   ;;  %s2633_s7 = scalar_lea.vmem [#allocation7], %s1910_s30  ;;  %s2652_s8 = scalar_lea.vmem [#allocation8], %s1909_s29 }
  0x90   : > { %1028 = vmatpush1.bf16.msra.mxu0 %v2025_v24  ;;  %v2085_v2 = vld [vmem:[%s2506_s5 + $0x178] ss:$132 sps:$4 sm:$0xff]   ;;  %v2094_v5 = vld [vmem:[%s2506_s5 + $0x80] ss:$132 sps:$4 sm:$0xff]   ;;  %s1649_s25 = scalar_lea.sflag [#allocation4], %s2501_s26  ;;  %p2857_p4 = scmp.ne.s32.totalorder %s2846_s28, 0 }
  0x91   : > { %1111 = vmatprep.subr.bf16.mxu0 %v2033_v27  ;;  %v342_v10 = vld [vmem:[%s2633_s7] sm:$0xff]  ;;  %s1657_s27 = smul.u32 (%p2857_p4), 33, %s2262_s15 }
  0x92   : > { %1071 = vmatpush1.bf16.msra.mxu1 %v2034_v29 }
  0x93   : > { %1870 = vmatmul.mubr.msk.bf16.vlgmr.msra.gmra.mrb[8].mxu0 %vm849_vm0, %v2522_v11  ;;  %1154 = vmatprep.subr.bf16.mxu1 %v2042_v30  ;;  %s1658_s9 = ssub.s32 (%p2857_p4), 65, %s1657_s27 }
  0x94   : > { %1112 = vmatpush1.bf16.msra.mxu0 %v2031_v28  ;;  %1143 = vmatprep.mubr.bf16.mxu0 %v2280_v0  ;;  %p1659_p6 = scmp.lt.s32.totalorder (%p2857_p4), %s1658_s9, 33 }
  0x95   : > { %1113 = vmatprep.subr.bf16.mxu0 %v2039_v31  ;;  %1871 = vmatmul.mubr.msk.bf16.vlgmr.msra.gmra.mrb[8].mxu1 %vm849_vm0, %v2522_v11 }
  0x96   : > { %1155 = vmatpush1.bf16.msra.mxu1 %v2040_v33  ;;  %1186 = vmatprep.mubr.bf16.mxu1 %v2280_v0 }
  0x97   : > { %1156 = vmatprep.subr.bf16.mxu1 %v2048_v34 }
  0x98   : > { %1114 = vmatpush1.bf16.msra.mxu0 %v2037_v32 }
  0x99   : > { %1197 = vmatprep.subr.bf16.mxu0 %v2045_v35 }
  0x9a   : > { %1157 = vmatpush1.bf16.msra.mxu1 %v2046_v37 }
  0x9b   : > { %1872 = vmatmul.mubr.msk.bf16.vlgmr.msra.gmra.mrb[12].mxu0 %vm849_vm0, %v2522_v11  ;;  %1240 = vmatprep.subr.bf16.mxu1 %v2054_v38 }
  0x9c   : > { %1198 = vmatpush1.bf16.msra.mxu0 %v2043_v36  ;;  %1229 = vmatprep.mubr.bf16.mxu0 %v2280_v0 }
  0x9d   : > { %1199 = vmatprep.subr.bf16.mxu0 %v2051_v39  ;;  %1873 = vmatmul.mubr.msk.bf16.vlgmr.msra.gmra.mrb[12].mxu1 %vm849_vm0, %v2522_v11 }
  0x9e   : > { %1241 = vmatpush1.bf16.msra.mxu1 %v2052_v41  ;;  %1272 = vmatprep.mubr.bf16.mxu1 %v2280_v0 }
  0x9f   : > { %1242 = vmatprep.subr.bf16.mxu1 %v2060_v42 }
  0xa0   : > { %1200 = vmatpush1.bf16.msra.mxu0 %v2049_v40 }
  0xa1   : > { %1283 = vmatprep.subr.bf16.mxu0 %v2057_v43 }
  0xa2   : > { %1243 = vmatpush1.bf16.msra.mxu1 %v2058_v45 }
  0xa3   : > { %1874 = vmatmul.mubr.msk.bf16.vlgmr.msra.gmra.mrb[16].mxu0 %vm849_vm0, %v2522_v11  ;;  %1326 = vmatprep.subr.bf16.mxu1 %v2066_v46 }
  0xa4   : > { %1284 = vmatpush1.bf16.msra.mxu0 %v2055_v44  ;;  %1315 = vmatprep.mubr.bf16.mxu0 %v2280_v0 }
  0xa5   : > { %1285 = vmatprep.subr.bf16.mxu0 %v2063_v47  ;;  %1875 = vmatmul.mubr.msk.bf16.vlgmr.msra.gmra.mrb[16].mxu1 %vm849_vm0, %v2522_v11  ;;  %v343_v47 = vld [vmem:[%s2633_s7 + $0x8] sm:$0xff] }
  0xa6   : > { %1327 = vmatpush1.bf16.msra.mxu1 %v2064_v49  ;;  %1358 = vmatprep.mubr.bf16.mxu1 %v2280_v0 }
  0xa7   : > { %1328 = vmatprep.subr.bf16.mxu1 %v2072_v50 }
  0xa8   : > { %1286 = vmatpush1.bf16.msra.mxu0 %v2061_v48 }
  0xa9   : > { %1369 = vmatprep.subr.bf16.mxu0 %v2069_v51 }
  0xaa   : > { %1329 = vmatpush1.bf16.msra.mxu1 %v2070_v52 }
  0xab   : > { %1876 = vmatmul.mubr.msk.bf16.vlgmr.msra.gmra.mrb[20].mxu0 %vm849_vm0, %v2522_v11  ;;  %1412 = vmatprep.subr.bf16.mxu1 %v2078_v54 }
  0xac   : > { %1370 = vmatpush1.bf16.msra.mxu0 %v2067_v53  ;;  %1401 = vmatprep.mubr.bf16.mxu0 %v2280_v0 }
  0xad   : > { %1371 = vmatprep.subr.bf16.mxu0 %v2075_v55  ;;  %1877 = vmatmul.mubr.msk.bf16.vlgmr.msra.gmra.mrb[20].mxu1 %vm849_vm0, %v2522_v11 }
  0xae   : > { %1413 = vmatpush1.bf16.msra.mxu1 %v2076_v56  ;;  %1444 = vmatprep.mubr.bf16.mxu1 %v2280_v0 }
  0xaf   : > { %1414 = vmatprep.subr.bf16.mxu1 %v2084_v58 }
  0xb0   : > { %1372 = vmatpush1.bf16.msra.mxu0 %v2073_v57 }
  0xb1   : > { %1455 = vmatprep.subr.bf16.mxu0 %v2081_v59 }
  0xb2   : > { %1415 = vmatpush1.bf16.msra.mxu1 %v2082_v60 }
  0xb3   : > { %1878 = vmatmul.mubr.msk.bf16.vlgmr.msra.gmra.mrb[24].mxu0 %vm849_vm0, %v2522_v11  ;;  %1498 = vmatprep.subr.bf16.mxu1 %v2090_v62 }
  0xb4   : > { %1456 = vmatpush1.bf16.msra.mxu0 %v2079_v61  ;;  %1487 = vmatprep.mubr.bf16.mxu0 %v2280_v0 }
  0xb5   : > { %1457 = vmatprep.subr.bf16.mxu0 %v2087_v63  ;;  %1879 = vmatmul.mubr.msk.bf16.vlgmr.msra.gmra.mrb[24].mxu1 %vm849_vm0, %v2522_v11 }
  0xb6   : > { %1499 = vmatpush1.bf16.msra.mxu1 %v2088_v1  ;;  %1530 = vmatprep.mubr.bf16.mxu1 %v2280_v0  ;;  %v352_v0 = vlaneseq }
  0xb7   : > { %1500 = vmatprep.subr.bf16.mxu1 %v2093_v3 }
  0xb8   : > { %1458 = vmatpush1.bf16.msra.mxu0 %v2085_v2  ;;  %v353_v8 = vshrl.u32 %v352_v0, 7 }
  0xb9   : > { %1899 = vmatprep.subr.bf16.mxu0 %v2281_v6 }
  0xba   : > { %1501 = vmatpush1.bf16.msra.mxu1 %v2091_v4  ;;  %v2631_v9 = vsub.s32 0, %v353_v8  ;;  %v2636_v12 = vsub.s32 1, %v353_v8  ;;  %v2638_v13 = vsub.s32 2, %v353_v8  ;;  %v2641_v15 = vsub.s32 3, %v353_v8 }
  0xbb   : > { %1880 = vmatmul.mubr.msk.bf16.vlgmr.msra.gmra.mrb[28].mxu0 %vm849_vm0, %v2522_v11  ;;  %v2646_v21 = vsub.s32 4, %v353_v8  ;;  %v2648_v24 = vsub.s32 5, %v353_v8  ;;  %v2656_v31 = vsub.s32 6, %v353_v8  ;;  %v2660_v35 = vsub.s32 7, %v353_v8 }
  0xbc   : > { %1900 = vmatpush3.bf16.msra.mxu0 %v2094_v5  ;;  %1903 = vmatprep.mubr.msk.bf16.mxu0 %vm2282_vm1, %v2281_v6  ;;  %v355_v14 = vrot.slane %v342_v10, %v2631_v9  ;;  %v363_v17 = vrot.slane %v342_v10, %v2638_v13  ;;  %v367_v20 = vrot.slane %v342_v10, %v2641_v15 }
  0xbd   : > { %1901 = vmatprep.subr.bf16.mxu0 %v2281_v6  ;;  %1881 = vmatmul.mubr.msk.bf16.vlgmr.msra.gmra.mrb[28].mxu1 %vm849_vm0, %v2522_v11  ;;  %v371_v34 = vrot.slane %v342_v10, %v2646_v21  ;;  %v375_v38 = vrot.slane %v342_v10, %v2648_v24  ;;  %v379_v41 = vrot.slane %v342_v10, %v2656_v31 }
  0xbe   : > { %v383_v44 = vrot.slane %v342_v10, %v2660_v35  ;;  %v387_v56 = vrot.slane %v343_v47, %v2631_v9  ;;  %v391_v59 = vrot.slane %v343_v47, %v2636_v12  ;;  %v395_v62 = vrot.slane %v343_v47, %v2638_v13 }
  0xbf   : > { %v399_v2 = vrot.slane %v343_v47, %v2641_v15 }
  0xc0   : > { %1902 = vmatpush3.bf16.msra.mxu0 %v2095_v7 }
  0xc3   : > { %1904 = vmatmul.mubr.msk.bf16.vlgmr.msra.gmra.mrb[32].mxu0 %vm849_vm0, %v2522_v11  ;;  %v359_v11 = vrot.slane %v342_v10, %v2636_v12 }
 0x156   : > { %v887_v16 = vpop.f32.mrb[0].mxu0 }
 0x157   : > { %v888_v18 = vadd.f32 %v887_v16, %v355_v14  ;;  %v889_v19 = vpop.f32.mrb[1].mxu0  ;;  %v403_v16 = vrot.slane %v343_v47, %v2646_v21 }
 0x158   : > { %v890_v22 = vadd.f32 %v889_v19, %v359_v11  ;;  %v891_v23 = vpop.f32.mrb[2].mxu0  ;;  %v930_v27 = vpop.f32.mrb[0].mxu1  ;;  %v407_v19 = vrot.slane %v343_v47, %v2648_v24 }
 0x159   : > { %1582 = vst [vmem:[%s2652_s8] sm:$0xff] %v888_v18  ;;  %v892_v25 = vadd.f32 %v891_v23, %v355_v14  ;;  %v893_v26 = vpop.f32.mrb[3].mxu0  ;;  %v931_v29 = vadd.f32 %v930_v27, %v363_v17  ;;  %v932_v30 = vpop.f32.mrb[1].mxu1  ;;  %v411_v23 = vrot.slane %v343_v47, %v2656_v31  ;;  %v415_v27 = vrot.slane %v343_v47, %v2660_v35 }
 0x15a   : > { %1583 = vst [vmem:[%s2652_s8 + $0x8] sm:$0xff] %v890_v22  ;;  %v894_v28 = vadd.f32 %v893_v26, %v359_v11  ;;  %v933_v32 = vadd.f32 %v932_v30, %v367_v20  ;;  %v934_v33 = vpop.f32.mrb[2].mxu1  ;;  %v344_v30 = vld [vmem:[%s2633_s7 + $0x10] sm:$0xff] }
 0x15b   : > { %1615 = vst [vmem:[%s2652_s8 + $0x108] sm:$0xff] %v892_v25  ;;  %1584 = vst [vmem:[%s2652_s8 + $0x10] sm:$0xff] %v931_v29  ;;  %v935_v36 = vadd.f32 %v934_v33, %v363_v17  ;;  %v936_v37 = vpop.f32.mrb[3].mxu1  ;;  %v427_v47 = vrot.slane %v344_v30, %v2638_v13 }
 0x15c   : > { %1616 = vst [vmem:[%s2652_s8 + $0x110] sm:$0xff] %v894_v28  ;;  %1585 = vst [vmem:[%s2652_s8 + $0x18] sm:$0xff] %v933_v32  ;;  %v937_v39 = vadd.f32 %v936_v37, %v367_v20 }
 0x15d   : > { %1617 = vst [vmem:[%s2652_s8 + $0x118] sm:$0xff] %v935_v36 }
 0x15e   : > { %v973_v40 = vpop.f32.mrb[4].mxu0  ;;  %1618 = vst [vmem:[%s2652_s8 + $0x120] sm:$0xff] %v937_v39 }
 0x15f   : > { %v974_v42 = vadd.f32 %v973_v40, %v371_v34  ;;  %v975_v43 = vpop.f32.mrb[5].mxu0 }
 0x160   : > { %v976_v45 = vadd.f32 %v975_v43, %v375_v38  ;;  %v977_v46 = vpop.f32.mrb[6].mxu0  ;;  %v1016_v50 = vpop.f32.mrb[4].mxu1 }
 0x161   : > { %1586 = vst [vmem:[%s2652_s8 + $0x20] sm:$0xff] %v974_v42  ;;  %v978_v48 = vadd.f32 %v977_v46, %v371_v34  ;;  %v979_v49 = vpop.f32.mrb[7].mxu0  ;;  %v1017_v52 = vadd.f32 %v1016_v50, %v379_v41  ;;  %v1018_v53 = vpop.f32.mrb[5].mxu1  ;;  %v431_v50 = vrot.slane %v344_v30, %v2641_v15 }
 0x162   : > { %1587 = vst [vmem:[%s2652_s8 + $0x28] sm:$0xff] %v976_v45  ;;  %v980_v51 = vadd.f32 %v979_v49, %v375_v38  ;;  %v1019_v54 = vadd.f32 %v1018_v53, %v383_v44  ;;  %v1020_v55 = vpop.f32.mrb[6].mxu1 }
 0x163   : > { %1619 = vst [vmem:[%s2652_s8 + $0x128] sm:$0xff] %v978_v48  ;;  %1588 = vst [vmem:[%s2652_s8 + $0x30] sm:$0xff] %v1017_v52  ;;  %v1021_v57 = vadd.f32 %v1020_v55, %v379_v41  ;;  %v1022_v58 = vpop.f32.mrb[7].mxu1  ;;  %v419_v41 = vrot.slane %v344_v30, %v2631_v9 }
 0x164   : > { %1620 = vst [vmem:[%s2652_s8 + $0x130] sm:$0xff] %v980_v51  ;;  %1589 = vst [vmem:[%s2652_s8 + $0x38] sm:$0xff] %v1019_v54  ;;  %v1023_v60 = vadd.f32 %v1022_v58, %v383_v44  ;;  %v423_v44 = vrot.slane %v344_v30, %v2636_v12 }
 0x165   : > { %1621 = vst [vmem:[%s2652_s8 + $0x138] sm:$0xff] %v1021_v57 }
 0x166   : > { %v1059_v61 = vpop.f32.mrb[8].mxu0  ;;  %1622 = vst [vmem:[%s2652_s8 + $0x140] sm:$0xff] %v1023_v60 }
 0x167   : > { %v1060_v63 = vadd.f32 %v1059_v61, %v387_v56  ;;  %v1061_v1 = vpop.f32.mrb[9].mxu0  ;;  %v435_v61 = vrot.slane %v344_v30, %v2646_v21 }
 0x168   : > { %v1062_v3 = vadd.f32 %v1061_v1, %v391_v59  ;;  %v1063_v4 = vpop.f32.mrb[10].mxu0  ;;  %v1102_v7 = vpop.f32.mrb[8].mxu1  ;;  %v439_v1 = vrot.slane %v344_v30, %v2648_v24 }
 0x169   : > { %1590 = vst [vmem:[%s2652_s8 + $0x40] sm:$0xff] %v1060_v63  ;;  %v1064_v5 = vadd.f32 %v1063_v4, %v387_v56  ;;  %v1065_v6 = vpop.f32.mrb[11].mxu0  ;;  %v1103_v8 = vadd.f32 %v1102_v7, %v395_v62  ;;  %v1104_v10 = vpop.f32.mrb[9].mxu1  ;;  %v443_v4 = vrot.slane %v344_v30, %v2656_v31  ;;  %v447_v7 = vrot.slane %v344_v30, %v2660_v35 }
 0x16a   : > { %1591 = vst [vmem:[%s2652_s8 + $0x48] sm:$0xff] %v1062_v3  ;;  %v1066_v0 = vadd.f32 %v1065_v6, %v391_v59  ;;  %v1105_v14 = vadd.f32 %v1104_v10, %v399_v2  ;;  %v1106_v11 = vpop.f32.mrb[10].mxu1  ;;  %v345_v10 = vld [vmem:[%s2633_s7 + $0x18] sm:$0xff] }
 0x16b   : > { %1623 = vst [vmem:[%s2652_s8 + $0x148] sm:$0xff] %v1064_v5  ;;  %1592 = vst [vmem:[%s2652_s8 + $0x50] sm:$0xff] %v1103_v8  ;;  %v1107_v17 = vadd.f32 %v1106_v11, %v395_v62  ;;  %v1108_v18 = vpop.f32.mrb[11].mxu1  ;;  %v459_v30 = vrot.slane %v345_v10, %v2638_v13 }
 0x16c   : > { %1624 = vst [vmem:[%s2652_s8 + $0x150] sm:$0xff] %v1066_v0  ;;  %1593 = vst [vmem:[%s2652_s8 + $0x58] sm:$0xff] %v1105_v14  ;;  %v1109_v20 = vadd.f32 %v1108_v18, %v399_v2 }
 0x16d   : > { %1625 = vst [vmem:[%s2652_s8 + $0x158] sm:$0xff] %v1107_v17 }
 0x16e   : > { %v1145_v22 = vpop.f32.mrb[12].mxu0  ;;  %1626 = vst [vmem:[%s2652_s8 + $0x160] sm:$0xff] %v1109_v20 }
 0x16f   : > { %v1146_v25 = vadd.f32 %v1145_v22, %v403_v16  ;;  %v1147_v26 = vpop.f32.mrb[13].mxu0 }
 0x170   : > { %v1148_v28 = vadd.f32 %v1147_v26, %v407_v19  ;;  %v1149_v29 = vpop.f32.mrb[14].mxu0  ;;  %v1188_v34 = vpop.f32.mrb[12].mxu1 }
 0x171   : > { %1594 = vst [vmem:[%s2652_s8 + $0x60] sm:$0xff] %v1146_v25  ;;  %v1150_v32 = vadd.f32 %v1149_v29, %v403_v16  ;;  %v1151_v33 = vpop.f32.mrb[15].mxu0  ;;  %v1189_v37 = vadd.f32 %v1188_v34, %v411_v23  ;;  %v1190_v38 = vpop.f32.mrb[13].mxu1 }
 0x172   : > { %1595 = vst [vmem:[%s2652_s8 + $0x68] sm:$0xff] %v1148_v28  ;;  %v1152_v36 = vadd.f32 %v1151_v33, %v407_v19  ;;  %v1191_v39 = vadd.f32 %v1190_v38, %v415_v27  ;;  %v1192_v40 = vpop.f32.mrb[14].mxu1 }
 0x173   : > { %1627 = vst [vmem:[%s2652_s8 + $0x168] sm:$0xff] %v1150_v32  ;;  %1596 = vst [vmem:[%s2652_s8 + $0x70] sm:$0xff] %v1189_v37  ;;  %v1193_v42 = vadd.f32 %v1192_v40, %v411_v23  ;;  %v1194_v43 = vpop.f32.mrb[15].mxu1  ;;  %v451_v23 = vrot.slane %v345_v10, %v2631_v9  ;;  %v463_v9 = vrot.slane %v345_v10, %v2641_v15 }
 0x174   : > { %1628 = vst [vmem:[%s2652_s8 + $0x170] sm:$0xff] %v1152_v36  ;;  %1597 = vst [vmem:[%s2652_s8 + $0x78] sm:$0xff] %v1191_v39  ;;  %v1195_v45 = vadd.f32 %v1194_v43, %v415_v27  ;;  %v455_v27 = vrot.slane %v345_v10, %v2636_v12  ;;  %v467_v43 = vrot.slane %v345_v10, %v2646_v21 }
 0x175   : > { %1629 = vst [vmem:[%s2652_s8 + $0x178] sm:$0xff] %v1193_v42  ;;  %v479_v21 = vrot.slane %v345_v10, %v2660_v35 }
 0x176   : > { %v1231_v46 = vpop.f32.mrb[16].mxu0  ;;  %1630 = vst [vmem:[%s2652_s8 + $0x180] sm:$0xff] %v1195_v45  ;;  %v471_v45 = vrot.slane %v345_v10, %v2648_v24 }
 0x177   : > { %v1232_v48 = vadd.f32 %v1231_v46, %v419_v41  ;;  %v1233_v49 = vpop.f32.mrb[17].mxu0 }
 0x178   : > { %v1234_v51 = vadd.f32 %v1233_v49, %v423_v44  ;;  %v1235_v52 = vpop.f32.mrb[18].mxu0  ;;  %v1274_v55 = vpop.f32.mrb[16].mxu1 }
 0x179   : > { %1598 = vst [vmem:[%s2652_s8 + $0x80] sm:$0xff] %v1232_v48  ;;  %v1236_v53 = vadd.f32 %v1235_v52, %v419_v41  ;;  %v1237_v54 = vpop.f32.mrb[19].mxu0  ;;  %v1275_v57 = vadd.f32 %v1274_v55, %v427_v47  ;;  %v1276_v58 = vpop.f32.mrb[17].mxu1  ;;  %v475_v48 = vrot.slane %v345_v10, %v2656_v31 }
 0x17a   : > { %1599 = vst [vmem:[%s2652_s8 + $0x88] sm:$0xff] %v1234_v51  ;;  %v1238_v56 = vadd.f32 %v1237_v54, %v423_v44  ;;  %v1277_v59 = vadd.f32 %v1276_v58, %v431_v50  ;;  %v1278_v60 = vpop.f32.mrb[18].mxu1 }
 0x17b   : > { %1631 = vst [vmem:[%s2652_s8 + $0x188] sm:$0xff] %v1236_v53  ;;  %1600 = vst [vmem:[%s2652_s8 + $0x90] sm:$0xff] %v1275_v57  ;;  %v1279_v62 = vadd.f32 %v1278_v60, %v427_v47  ;;  %v1280_v63 = vpop.f32.mrb[19].mxu1  ;;  %v1799_v60 = vld [vmem:[%s2633_s7 + $0x20] ss:$0 sm:$0xff] }
 0x17c   : > { %1632 = vst [vmem:[%s2652_s8 + $0x190] sm:$0xff] %v1238_v56  ;;  %1601 = vst [vmem:[%s2652_s8 + $0x98] sm:$0xff] %v1277_v59  ;;  %v1281_v2 = vadd.f32 %v1280_v63, %v431_v50 }
 0x17d   : > { %1633 = vst [vmem:[%s2652_s8 + $0x198] sm:$0xff] %v1279_v62 }
 0x17e   : > { %v1317_v3 = vpop.f32.mrb[20].mxu0  ;;  %1634 = vst [vmem:[%s2652_s8 + $0x1a0] sm:$0xff] %v1281_v2 }
 0x17f   : > { %v1318_v5 = vadd.f32 %v1317_v3, %v435_v61  ;;  %v1319_v6 = vpop.f32.mrb[21].mxu0 }
 0x180   : > { %v1320_v0 = vadd.f32 %v1319_v6, %v439_v1  ;;  %v1321_v8 = vpop.f32.mrb[22].mxu0  ;;  %v1360_v16 = vpop.f32.mrb[20].mxu1 }
 0x181   : > { %1602 = vst [vmem:[%s2652_s8 + $0xa0] sm:$0xff] %v1318_v5  ;;  %v1322_v14 = vadd.f32 %v1321_v8, %v435_v61  ;;  %v1323_v11 = vpop.f32.mrb[23].mxu0  ;;  %v1361_v18 = vadd.f32 %v1360_v16, %v443_v4  ;;  %v1362_v19 = vpop.f32.mrb[21].mxu1 }
 0x182   : > { %1603 = vst [vmem:[%s2652_s8 + $0xa8] sm:$0xff] %v1320_v0  ;;  %v1324_v17 = vadd.f32 %v1323_v11, %v439_v1  ;;  %v1363_v20 = vadd.f32 %v1362_v19, %v447_v7  ;;  %v1364_v22 = vpop.f32.mrb[22].mxu1 }
 0x183   : > { %1635 = vst [vmem:[%s2652_s8 + $0x1a8] sm:$0xff] %v1322_v14  ;;  %1604 = vst [vmem:[%s2652_s8 + $0xb0] sm:$0xff] %v1361_v18  ;;  %v1365_v25 = vadd.f32 %v1364_v22, %v443_v4  ;;  %v1366_v26 = vpop.f32.mrb[23].mxu1 }
 0x184   : > { %1636 = vst [vmem:[%s2652_s8 + $0x1b0] sm:$0xff] %v1324_v17  ;;  %1605 = vst [vmem:[%s2652_s8 + $0xb8] sm:$0xff] %v1363_v20  ;;  %v1367_v28 = vadd.f32 %v1366_v26, %v447_v7 }
 0x185   : > { %1637 = vst [vmem:[%s2652_s8 + $0x1b8] sm:$0xff] %v1365_v25 }
 0x186   : > { %v1403_v29 = vpop.f32.mrb[24].mxu0  ;;  %1638 = vst [vmem:[%s2652_s8 + $0x1c0] sm:$0xff] %v1367_v28 }
 0x187   : > { %v1404_v32 = vadd.f32 %v1403_v29, %v451_v23  ;;  %v1405_v33 = vpop.f32.mrb[25].mxu0 }
 0x188   : > { %v1406_v34 = vadd.f32 %v1405_v33, %v455_v27  ;;  %v1407_v36 = vpop.f32.mrb[26].mxu0  ;;  %v1446_v38 = vpop.f32.mrb[24].mxu1 }
 0x189   : > { %1606 = vst [vmem:[%s2652_s8 + $0xc0] sm:$0xff] %v1404_v32  ;;  %v1408_v37 = vadd.f32 %v1407_v36, %v451_v23  ;;  %v1409_v12 = vpop.f32.mrb[27].mxu0  ;;  %v1447_v40 = vadd.f32 %v1446_v38, %v459_v30  ;;  %v1448_v13 = vpop.f32.mrb[25].mxu1 }
 0x18a   : > { %1607 = vst [vmem:[%s2652_s8 + $0xc8] sm:$0xff] %v1406_v34  ;;  %v1410_v39 = vadd.f32 %v1409_v12, %v455_v27  ;;  %v1449_v41 = vadd.f32 %v1448_v13, %v463_v9  ;;  %v1450_v42 = vpop.f32.mrb[26].mxu1 }
 0x18b   : > { %1639 = vst [vmem:[%s2652_s8 + $0x1c8] sm:$0xff] %v1408_v37  ;;  %1608 = vst [vmem:[%s2652_s8 + $0xd0] sm:$0xff] %v1447_v40  ;;  %v1451_v15 = vadd.f32 %v1450_v42, %v459_v30  ;;  %v1452_v44 = vpop.f32.mrb[27].mxu1 }
 0x18c   : > { %1640 = vst [vmem:[%s2652_s8 + $0x1d0] sm:$0xff] %v1410_v39  ;;  %1609 = vst [vmem:[%s2652_s8 + $0xd8] sm:$0xff] %v1449_v41  ;;  %v1453_v46 = vadd.f32 %v1452_v44, %v463_v9 }
 0x18d   : > { %1641 = vst [vmem:[%s2652_s8 + $0x1d8] sm:$0xff] %v1451_v15 }
 0x18e   : > { %v1489_v47 = vpop.f32.mrb[28].mxu0  ;;  %1642 = vst [vmem:[%s2652_s8 + $0x1e0] sm:$0xff] %v1453_v46 }
 0x18f   : > { %v1490_v49 = vadd.f32 %v1489_v47, %v467_v43  ;;  %v1491_v50 = vpop.f32.mrb[29].mxu0 }
 0x190   : > { %v1492_v51 = vadd.f32 %v1491_v50, %v471_v45  ;;  %v1493_v52 = vpop.f32.mrb[30].mxu0  ;;  %v1532_v54 = vpop.f32.mrb[28].mxu1 }
 0x191   : > { %1610 = vst [vmem:[%s2652_s8 + $0xe0] sm:$0xff] %v1490_v49  ;;  %v1494_v24 = vadd.f32 %v1493_v52, %v467_v43  ;;  %v1495_v53 = vpop.f32.mrb[31].mxu0  ;;  %v1533_v31 = vadd.f32 %v1532_v54, %v475_v48  ;;  %v1534_v56 = vpop.f32.mrb[29].mxu1 }
 0x192   : > { %1611 = vst [vmem:[%s2652_s8 + $0xe8] sm:$0xff] %v1492_v51  ;;  %v1496_v55 = vadd.f32 %v1495_v53, %v471_v45  ;;  %v1535_v57 = vadd.f32 %v1534_v56, %v479_v21  ;;  %v1536_v58 = vpop.f32.mrb[30].mxu1 }
 0x193   : > { %1643 = vst [vmem:[%s2652_s8 + $0x1e8] sm:$0xff] %v1494_v24  ;;  %1612 = vst [vmem:[%s2652_s8 + $0xf0] sm:$0xff] %v1533_v31  ;;  %v1537_v35 = vadd.f32 %v1536_v58, %v475_v48  ;;  %v1538_v59 = vpop.f32.mrb[31].mxu1 }
 0x194   : > { %1644 = vst [vmem:[%s2652_s8 + $0x1f0] sm:$0xff] %v1496_v55  ;;  %1613 = vst [vmem:[%s2652_s8 + $0xf8] sm:$0xff] %v1535_v57  ;;  %v1539_v61 = vadd.f32 %v1538_v59, %v479_v21 }
 0x195   : > { %1645 = vst [vmem:[%s2652_s8 + $0x1f8] sm:$0xff] %v1537_v35  ;;  %1655 = sbr.rel (!%p2857_p4) target bundleno = 441 (0x1b9), region = 48 }
 0x196   : > { %v1575_v62 = vpop.f32.mrb[32].mxu0  ;;  %1646 = vst [vmem:[%s2652_s8 + $0x200] sm:$0xff] %v1539_v61 }
 0x197   : > { %v1576_v63 = vadd.f32 %v1799_v60, %v1575_v62  ;;  %v1905_v1 = vpop.f32.mrb[33].mxu0 }
 0x198   : > { %v1578_v2 = vpop.f32.mrb[34].mxu0 }
 0x199   : > { %1614 = vst [vmem:[%s2652_s8 + $0x100] sm:$0xff] %v1576_v63  ;;  %v1579_v3 = vadd.f32 %v1799_v60, %v1578_v2  ;;  %v1906_v4 = vpop.f32.mrb[35].mxu0 }
 0x19b   : > { %1647 = vst [vmem:[%s2652_s8 + $0x208] sm:$0xff] %v1579_v3 }
 0x19c   : > { %s2869_s9 = smov (!%p1659_p6, %s1658_s9), 33 }
 0x19d   : > { %s2763_s22 = sshll.u32 %s2869_s9, 8 }
 0x19e   : > { %s1663_s21 = ssub.s32 8448, %s2763_s22 }
 0x19f   : > { %1664 = vsyncadd %s1649_s25, %s1663_s21  ;;  %p1884_p1 = scmp.ne.s32.totalorder %s2763_s22, 0  ;;  %s1893_s28 = smul.u32 4224, %s2262_s15 }
 0x1a0   : > { %s1886_s23 = sshll.u32 %s2869_s9, 3  ;;  %s1672_s11 = sshll.u32 %s2652_s8, 4  ;;  %s2777_s11 = int_to_ptr.vmem [resolvable:$true] %s1672_s11 }
 0x1a1   : > { %s2775_s1 = scalar_lea.hbm %s2833_s3, %s1893_s28  ;;  %s2184_s18 = scalar_lea.vmem %s2777_s11, %s2763_s22 }
 0x1a2   : > { %p2185_p12 = scmp.ne.s32.totalorder %s2777_s11, %s2184_s18  ;;  %s2283_s19 = smov [#allocation8]  }
 0x1a3   : > { %s2188_s29 = sshll.u32 %s2283_s19, 4  ;;  %s2189_s29 = int_to_ptr.vmem [resolvable:$false] %s2188_s29 }
 0x1a4   : > { %p2186_p0 = pnand %p2185_p12, %p1884_p1  ;;  %s2190_s15 = scalar_lea.vmem %s2189_s29, 16896 }
 0x1a5   : > { %p2191_p5 = scmp.lt.s32.totalorder %s2777_s11, %s2189_s29  ;;  %p2192_p8 = scmp.lt.s32.totalorder %s2190_s15, %s2184_s18 }
 0x1a6   : > { %p2187_p9 = pneg %p2186_p0 }
 0x1a7   : > { %p2193_p10 = por %p2192_p8, %p2191_p5 }
 0x1a9   : > { %p2194_p13 = pnand %p2193_p10, %p2187_p9 }
 0x1ab   : > { %2197 = shalt.err (!%p2194_p13)
}
 0x1ac   : > { %s2198_s6 = scalar_lea.hbm %s2775_s1, %s2763_s22  ;;  %s2202_s7 = scalar_lea.hbm %s2833_s3, 16640 }
 0x1ad   : > { %p2199_p7 = scmp.ne.s32.totalorder %s2775_s1, %s2198_s6  ;;  %p2203_p11 = scmp.lt.u32.totalorder %s2775_s1, %s2833_s3 }
 0x1ae   : > { %p2204_p4 = scmp.lt.u32.totalorder %s2202_s7, %s2198_s6  ;;  %p2206_p12 = scmp.lt.u32.totalorder %s2198_s6, %s2775_s1 }
 0x1af   : > { %p2200_p3 = pnand %p2199_p7, %p1884_p1 }
 0x1b0   : > { %p2205_p6 = por %p2204_p4, %p2203_p11 }
 0x1b1   : > { %p2201_p2 = pneg %p2200_p3 }
 0x1b2   : > { %p2207_p0 = por %p2206_p12, %p2205_p6 }
 0x1b4   : > { %p2208_p9 = pnand %p2207_p0, %p2201_p2 }
 0x1b6   : > { %2211 = shalt.err (!%p2208_p9)
}
 0x1b7   : > { %s2284_s21 = smov 4224   ;;  %s2285_s28 = smov 8320  }
 0x1b8   : > { %1678 = dma.vmem_to_hbm [thread:$0]  (%p1884_p1), %s2777_s11, %s2763_s22, %s2775_s1, %s1649_s25, %s2284_s21, %s2285_s28, %s1886_s23  }
 0x1b9 PF: > { %s1687_s10 = sand.u32 1, %s2250_s12   ;;  %p2858_p5 = scmp.ne.s32.totalorder %s2847_s4, 0 }
 0x1ba   : > { %p2859_p8 = scmp.ge.s32.totalorder %s2270_s17, 2  ;;  %s1688_s20 = scalar_lea.sflag [#allocation4], %s1687_s10 }
 0x1bc   : > { %p1932_p10 = pnand %p2859_p8, %p2858_p5 }
 0x1be   : > { %2245 = dma.done.wait (!%p1932_p10), %s1688_s20, 8448  }
 0x1bf   : > { %2247 = vsyncadd (!%p1932_p10), %s1688_s20, 4294958848  ;;  %s20_s17 = sadd.s32 1, %s2270_s17   ;;  %s2860_s26 = sld [smem:[#allocation12_spill]] }
 0x1c0   : > { %p17_p13 = scmp.ge.s32.totalorder %s20_s17, 4   ;;  %s2861_s12 = smov %s2254_s13 }
 0x1c1   : > { %s2862_s13 = smov %s2258_s14  ;;  %s2863_s14 = smov %s2354_s24 }
 0x1c2   : > { %s2864_s15 = smov %s2266_s16  ;;  %19 = sbr.rel (!%p17_p13) target bundleno = 9 (0x9), region = 94 }
 0x1c5   : > { %s2865_s16 = smov %s2860_s26 }
 0x1c9   :  { %1693 = vsyncpa [#allocation3], 1 }
 0x1ca   :  { %1695 = vsyncpa [#allocation3 + $0x1], 1 }
 0x1cb   :  { %1696 = vsyncpa [#allocation6], 1 }
 0x1cc   :  { %1698 = vsyncpa [#allocation6 + $0x1], 1 }
 0x1cd   :  { %1699 = vsyncpa [#allocation4], 1 }
 0x1ce   :  { %1701 = vsyncpa [#allocation4 + $0x1], 1 }

</bundles_post_ra>
